<compile_context>
chip_gen: v7x
topology: tpu7x:2x2x1
jax: 0.10.0
libtpu: 0.0.40
codegen_flags: <defaults>
</compile_context>

<pallas_src>
import functools

import jax
import jax.numpy as jnp
from jax.experimental import pallas as pl
from jax.experimental.pallas import tpu as pltpu

LOG_STD_MIN = -20.0
LOG_STD_MAX = 2.0

MATMUL_DTYPE = jnp.bfloat16   # jnp.float32 -> exact f32 math (slower MXU path)
LANE = 128
SUBLANE = 8


def _round_up(n, m):
    return (n + m - 1) // m * m


# ---------------------------------------------------------------------------
# Pallas kernel: 4 x (Linear + ReLU) + fused (mean || log_std) head.
# One grid step processes a (TILE_B, F_pad) slab; weights are VMEM-resident.
# ---------------------------------------------------------------------------
def _policy_mlp_kernel(x_ref,
                       w1_ref, b1_ref, w2_ref, b2_ref,
                       w3_ref, b3_ref, w4_ref, b4_ref,
                       wh_ref, bh_ref,
                       out_ref, *, logstd_lane_start):
    def dense(h, w_ref, b_ref):
        # bf16 (or f32) operands, f32 accumulation on the MXU; f32 bias add.
        return jnp.dot(h.astype(w_ref.dtype), w_ref[...],
                       preferred_element_type=jnp.float32) + b_ref[...]

    h = x_ref[...]
    h = jnp.maximum(dense(h, w1_ref, b1_ref), 0.0)
    h = jnp.maximum(dense(h, w2_ref, b2_ref), 0.0)
    h = jnp.maximum(dense(h, w3_ref, b3_ref), 0.0)
    h = jnp.maximum(dense(h, w4_ref, b4_ref), 0.0)

    head = dense(h, wh_ref, bh_ref)              # [TILE_B, head_pad]
    # Clamp only the log_std half (lanes >= logstd_lane_start); the mean half
    # passes through untouched.  VPU select, no lane movement.
    lane = jax.lax.broadcasted_iota(jnp.int32, head.shape, 1)
    out_ref[...] = jnp.where(lane >= logstd_lane_start,
                             jnp.clip(head, LOG_STD_MIN, LOG_STD_MAX),
                             head)


def policy_mlp_pallas(x, params, num_actions, *, tile_b=256,
                      matmul_dtype=MATMUL_DTYPE):
    """x: [B, num_inputs] f32.  Returns (mean [B, A], log_std [B, A]) f32."""
    B, F = x.shape
    H = params["w1"].shape[1]
    A = num_actions

    F_pad = _round_up(max(F, LANE), LANE)
    H_pad = _round_up(max(H, LANE), LANE)
    a_pad = 64 if A <= 64 else _round_up(A, LANE)
    head_pad = 2 * a_pad                      # fused mean||log_std, % 128 == 0

    # Adaptive batch tiling: split B as evenly as possible into <=tile_b
    # chunks (sublane-aligned) so padded rows (wasted MXU work / writeback)
    # are minimized while the block second-to-last dim stays % 8 == 0.
    tile_cap = max(SUBLANE, _round_up(min(tile_b, B), SUBLANE))
    num_tiles = -(-B // tile_cap)
    tile_b = _round_up(-(-B // num_tiles), SUBLANE)
    B_pad = tile_b * num_tiles

    def pad_to(a, rows, cols, dtype):
        return jnp.pad(a, ((0, rows - a.shape[0]),
                           (0, cols - a.shape[1]))).astype(dtype)

    # Zero-padded (math-preserving) weights, cast for the MXU; biases stay f32.
    w1 = pad_to(params["w1"], F_pad, H_pad, matmul_dtype)
    w2 = pad_to(params["w2"], H_pad, H_pad, matmul_dtype)
    w3 = pad_to(params["w3"], H_pad, H_pad, matmul_dtype)
    w4 = pad_to(params["w4"], H_pad, H_pad, matmul_dtype)
    b1 = pad_to(params["b1"], 1, H_pad, jnp.float32)
    b2 = pad_to(params["b2"], 1, H_pad, jnp.float32)
    b3 = pad_to(params["b3"], 1, H_pad, jnp.float32)
    b4 = pad_to(params["b4"], 1, H_pad, jnp.float32)

    # Fused head: columns [0, a_pad) = mean, [a_pad, 2*a_pad) = log_std.
    wh = jnp.concatenate([pad_to(params["wm"], H_pad, a_pad, matmul_dtype),
                          pad_to(params["ws"], H_pad, a_pad, matmul_dtype)],
                         axis=1)
    bh = jnp.concatenate([pad_to(params["bm"], 1, a_pad, jnp.float32),
                          pad_to(params["bs"], 1, a_pad, jnp.float32)],
                         axis=1)

    # Activations enter the kernel in the MXU dtype (halves input HBM traffic
    # in bf16 mode); padding zeros are exact in either dtype.
    x_pad = jnp.pad(x, ((0, B_pad - B), (0, F_pad - F))).astype(matmul_dtype)

    grid = (num_tiles,)
    const = lambda i: (0, 0)          # weights/biases resident across the grid
    in_specs = [
        pl.BlockSpec((tile_b, F_pad), lambda i: (i, 0)),
        pl.BlockSpec((F_pad, H_pad), const), pl.BlockSpec((1, H_pad), const),
        pl.BlockSpec((H_pad, H_pad), const), pl.BlockSpec((1, H_pad), const),
        pl.BlockSpec((H_pad, H_pad), const), pl.BlockSpec((1, H_pad), const),
        pl.BlockSpec((H_pad, H_pad), const), pl.BlockSpec((1, H_pad), const),
        pl.BlockSpec((H_pad, head_pad), const),
        pl.BlockSpec((1, head_pad), const),
    ]
    out_spec = pl.BlockSpec((tile_b, head_pad), lambda i: (i, 0))

    wbytes = sum(int(a.size) * a.dtype.itemsize
                 for a in (w1, b1, w2, b2, w3, b3, w4, b4, wh, bh))
    cost = pl.CostEstimate(
        flops=2 * B_pad * (F_pad * H_pad + 3 * H_pad * H_pad
                           + H_pad * head_pad),
        transcendentals=0,
        bytes_accessed=int(x_pad.size) * x_pad.dtype.itemsize + wbytes
                       + B_pad * head_pad * 4)

    out = pl.pallas_call(
        functools.partial(_policy_mlp_kernel, logstd_lane_start=a_pad),
        out_shape=jax.ShapeDtypeStruct((B_pad, head_pad), jnp.float32),
        grid_spec=pltpu.PrefetchScalarGridSpec(
            num_scalar_prefetch=0,
            grid=grid,
            in_specs=in_specs,
            out_specs=out_spec),
        compiler_params=pltpu.CompilerParams(
            dimension_semantics=("parallel",)),
        cost_estimate=cost,
    )(x_pad, w1, b1, w2, b2, w3, b3, w4, b4, wh, bh)

    mean = out[:B, :A]
    log_std = out[:B, a_pad:a_pad + A]
    return mean, log_std


# ---------------------------------------------------------------------------
# Embedding layer (glue, plain JAX): per-categorical-column lookup + concat,
# mirrors `self.embedding_layer(cat_tensor.long())`.
# ---------------------------------------------------------------------------
def embedding_forward(cat_idx, emb_tables):
    outs = []
    for col, table in enumerate(emb_tables):
        outs.append(jnp.take(table, cat_idx[:, col], axis=0))
    return jnp.concatenate(outs, axis=1)


# ---------------------------------------------------------------------------
# Full PolicyNetwork.forward
# ---------------------------------------------------------------------------
def policy_forward(state, emb_tables, params, num_cat_cols, num_actions):
    cat_tensor = state[:, :num_cat_cols].astype(jnp.int32)       # .long()
    num_tensor = state[:, num_cat_cols:]
    embedding = embedding_forward(cat_tensor, emb_tables)
    state_with_embeddings = jnp.concatenate([embedding, num_tensor], axis=1)
    return policy_mlp_pallas(state_with_embeddings, params, num_actions)


# ---------------------------------------------------------------------------
# Parameter construction (mimics nn.Linear default init for hidden layers,
# uniform(-init_w, init_w) for the two heads).
# ---------------------------------------------------------------------------
def make_params(key, num_inputs, num_actions, hidden_size, init_w=0.003):
    keys = jax.random.split(key, 12)

    def linear(kw, kb, fan_in, fan_out):
        bound = 1.0 / jnp.sqrt(jnp.float32(fan_in))
        w = jax.random.uniform(kw, (fan_in, fan_out), jnp.float32, -bound, bound)
        b = jax.random.uniform(kb, (1, fan_out), jnp.float32, -bound, bound)
        return w, b

    w1, b1 = linear(keys[0], keys[1], num_inputs, hidden_size)
    w2, b2 = linear(keys[2], keys[3], hidden_size, hidden_size)
    w3, b3 = linear(keys[4], keys[5], hidden_size, hidden_size)
    w4, b4 = linear(keys[6], keys[7], hidden_size, hidden_size)

    wm = jax.random.uniform(keys[8], (hidden_size, num_actions), jnp.float32, -init_w, init_w)
    bm = jax.random.uniform(keys[9], (1, num_actions), jnp.float32, -init_w, init_w)
    ws = jax.random.uniform(keys[10], (hidden_size, num_actions), jnp.float32, -init_w, init_w)
    bs = jax.random.uniform(keys[11], (1, num_actions), jnp.float32, -init_w, init_w)

    return dict(w1=w1, b1=b1, w2=w2, b2=b2, w3=w3, b3=b3, w4=w4, b4=b4,
                wm=wm, bm=bm, ws=ws, bs=bs)


# Reference MLP with the same matmul dtype as the kernel (plain JAX).
def _reference_forward(x, params, matmul_dtype):
    def dense(h, w, b):
        return jnp.dot(h.astype(matmul_dtype), w.astype(matmul_dtype),
                       preferred_element_type=jnp.float32) + b
    h = jnp.maximum(dense(x, params["w1"], params["b1"]), 0.0)
    h = jnp.maximum(dense(h, params["w2"], params["b2"]), 0.0)
    h = jnp.maximum(dense(h, params["w3"], params["b3"]), 0.0)
    h = jnp.maximum(dense(h, params["w4"], params["b4"]), 0.0)
    mean = dense(h, params["wm"], params["bm"])
    log_std = jnp.clip(dense(h, params["ws"], params["bs"]),
                       LOG_STD_MIN, LOG_STD_MAX)
    return mean, log_std


if __name__ == "__main__":
    key = jax.random.PRNGKey(0)

    # Config consistent with the module's forward:
    #   3 categorical columns (cards 5, 7, 4), embedding dim 4, 20 numeric
    #   features -> num_inputs = 3*4 + 20 = 32.
    B = 8
    cardinalities = [5, 7, 4]
    emb_dim = 4
    num_numeric = 20
    num_cat_cols = len(cardinalities)
    num_inputs = num_cat_cols * emb_dim + num_numeric
    hidden_size = 32
    num_actions = 4

    k_state_cat, k_state_num, k_emb, k_params = jax.random.split(key, 4)

    emb_keys = jax.random.split(k_emb, num_cat_cols)
    emb_tables = [
        jax.random.normal(emb_keys[i], (cardinalities[i], emb_dim), jnp.float32)
        for i in range(num_cat_cols)
    ]

    cat_idx = jax.random.randint(
        k_state_cat, (B, num_cat_cols), 0, jnp.array(cardinalities)
    ).astype(jnp.float32)
    num_feats = jax.random.normal(k_state_num, (B, num_numeric), jnp.float32)
    state = jnp.concatenate([cat_idx, num_feats], axis=1)

    params = make_params(k_params, num_inputs, num_actions, hidden_size)

    fwd = jax.jit(functools.partial(policy_forward,
                                    num_cat_cols=num_cat_cols,
                                    num_actions=num_actions))
    mean, log_std = fwd(state, emb_tables, params)
    jax.block_until_ready((mean, log_std))

    # --- correctness checks ------------------------------------------------
    cat_t = state[:, :num_cat_cols].astype(jnp.int32)
    x = jnp.concatenate([embedding_forward(cat_t, emb_tables),
                         state[:, num_cat_cols:]], axis=1)

    # (1) reference using the kernel's matmul dtype (tight match).
    mean_ref, log_std_ref = _reference_forward(x, params, MATMUL_DTYPE)
    assert mean.shape == (B, num_actions) and log_std.shape == (B, num_actions)
    assert jnp.allclose(mean, mean_ref, atol=1e-4, rtol=1e-4)
    assert jnp.allclose(log_std, log_std_ref, atol=1e-4, rtol=1e-4)

    # (2) pure-f32 reference (module semantics), loose tolerance for bf16 MXU.
    mean_f32, log_std_f32 = _reference_forward(x, params, jnp.float32)
    assert jnp.allclose(mean, mean_f32, atol=2e-2, rtol=2e-2)
    assert jnp.allclose(log_std, log_std_f32, atol=2e-2, rtol=2e-2)

    # Larger batch exercises the multi-step batch grid (adaptive tiling) and
    # the "parallel" dimension semantics (both TCs on v7x).
    B2 = 300
    k2a, k2b = jax.random.split(jax.random.PRNGKey(1))
    cat2 = jax.random.randint(k2a, (B2, num_cat_cols), 0,
                              jnp.array(cardinalities)).astype(jnp.float32)
    num2 = jax.random.normal(k2b, (B2, num_numeric), jnp.float32)
    state2 = jnp.concatenate([cat2, num2], axis=1)
    mean2, log_std2 = fwd(state2, emb_tables, params)
    jax.block_until_ready((mean2, log_std2))

    x2 = jnp.concatenate(
        [embedding_forward(state2[:, :num_cat_cols].astype(jnp.int32),
                           emb_tables),
         state2[:, num_cat_cols:]], axis=1)
    mean2_ref, log_std2_ref = _reference_forward(x2, params, MATMUL_DTYPE)
    assert mean2.shape == (B2, num_actions)
    assert jnp.allclose(mean2, mean2_ref, atol=1e-4, rtol=1e-4)
    assert jnp.allclose(log_std2, log_std2_ref, atol=1e-4, rtol=1e-4)

    print("KERNEL_OK")
</pallas_src>

<mosaic_0001>
module attributes {stable_mosaic.version = 11 : i64} {
  func.func @_policy_mlp_kernel(%arg0: i32, %arg1: memref<8x128xbf16, #tpu.memory_space<vmem>>, %arg2: memref<128x128xbf16, #tpu.memory_space<vmem>>, %arg3: memref<1x128xf32, #tpu.memory_space<vmem>>, %arg4: memref<128x128xbf16, #tpu.memory_space<vmem>>, %arg5: memref<1x128xf32, #tpu.memory_space<vmem>>, %arg6: memref<128x128xbf16, #tpu.memory_space<vmem>>, %arg7: memref<1x128xf32, #tpu.memory_space<vmem>>, %arg8: memref<128x128xbf16, #tpu.memory_space<vmem>>, %arg9: memref<1x128xf32, #tpu.memory_space<vmem>>, %arg10: memref<128x128xbf16, #tpu.memory_space<vmem>>, %arg11: memref<1x128xf32, #tpu.memory_space<vmem>>, %arg12: memref<8x128xf32, #tpu.memory_space<vmem>>) attributes {dimension_semantics = [#tpu.dimension_semantics<parallel>], iteration_bounds = array<i64: 1>, scalar_prefetch = 0 : i64, scratch_operands = 0 : i64, tpu.core_type = #tpu.core_type<tc>, window_params = [{transform_indices = @transform_0, window_bounds = array<i64: 8, 128>}, {pipeline_mode = #tpu.pipeline_mode<synchronous>, transform_indices = @transform_1, window_bounds = array<i64: 128, 128>}, {pipeline_mode = #tpu.pipeline_mode<synchronous>, transform_indices = @transform_2, window_bounds = array<i64: 1, 128>}, {pipeline_mode = #tpu.pipeline_mode<synchronous>, transform_indices = @transform_3, window_bounds = array<i64: 128, 128>}, {pipeline_mode = #tpu.pipeline_mode<synchronous>, transform_indices = @transform_4, window_bounds = array<i64: 1, 128>}, {pipeline_mode = #tpu.pipeline_mode<synchronous>, transform_indices = @transform_5, window_bounds = array<i64: 128, 128>}, {pipeline_mode = #tpu.pipeline_mode<synchronous>, transform_indices = @transform_6, window_bounds = array<i64: 1, 128>}, {pipeline_mode = #tpu.pipeline_mode<synchronous>, transform_indices = @transform_7, window_bounds = array<i64: 128, 128>}, {pipeline_mode = #tpu.pipeline_mode<synchronous>, transform_indices = @transform_8, window_bounds = array<i64: 1, 128>}, {pipeline_mode = #tpu.pipeline_mode<synchronous>, transform_indices = @transform_9, window_bounds = array<i64: 128, 128>}, {pipeline_mode = #tpu.pipeline_mode<synchronous>, transform_indices = @transform_10, window_bounds = array<i64: 1, 128>}, {transform_indices = @transform_11, window_bounds = array<i64: 8, 128>}]} {
    %c0 = arith.constant 0 : index
    %c0_0 = arith.constant 0 : index
    %0 = vector.load %arg1[%c0, %c0_0] : memref<8x128xbf16, #tpu.memory_space<vmem>>, vector<8x128xbf16>
    %c0_1 = arith.constant 0 : index
    %c0_2 = arith.constant 0 : index
    %1 = vector.load %arg2[%c0_1, %c0_2] : memref<128x128xbf16, #tpu.memory_space<vmem>>, vector<128x128xbf16>
    %cst = arith.constant dense<0.000000e+00> : vector<8x128xf32>
    %2 = tpu.matmul %0, %1, %cst {dimension_numbers = #tpu.dot_dimension_numbers<[1], [0], [0], [1], [0, 0, 1, 1], [], []>} : vector<8x128xbf16>, vector<128x128xbf16>, vector<8x128xf32> -> vector<8x128xf32>
    %c0_3 = arith.constant 0 : index
    %c0_4 = arith.constant 0 : index
    %3 = vector.load %arg3[%c0_3, %c0_4] : memref<1x128xf32, #tpu.memory_space<vmem>>, vector<1x128xf32>
    %4 = vector.broadcast %3 : vector<1x128xf32> to vector<8x128xf32>
    %5 = arith.addf %2, %4 : vector<8x128xf32>
    %cst_5 = arith.constant 0.000000e+00 : f32
    %6 = vector.broadcast %cst_5 : f32 to vector<8x128xf32>
    %7 = arith.maximumf %5, %6 : vector<8x128xf32>
    %8 = arith.truncf %7 : vector<8x128xf32> to vector<8x128xbf16>
    %c0_6 = arith.constant 0 : index
    %c0_7 = arith.constant 0 : index
    %9 = vector.load %arg4[%c0_6, %c0_7] : memref<128x128xbf16, #tpu.memory_space<vmem>>, vector<128x128xbf16>
    %cst_8 = arith.constant dense<0.000000e+00> : vector<8x128xf32>
    %10 = tpu.matmul %8, %9, %cst_8 {dimension_numbers = #tpu.dot_dimension_numbers<[1], [0], [0], [1], [0, 0, 1, 1], [], []>} : vector<8x128xbf16>, vector<128x128xbf16>, vector<8x128xf32> -> vector<8x128xf32>
    %c0_9 = arith.constant 0 : index
    %c0_10 = arith.constant 0 : index
    %11 = vector.load %arg5[%c0_9, %c0_10] : memref<1x128xf32, #tpu.memory_space<vmem>>, vector<1x128xf32>
    %12 = vector.broadcast %11 : vector<1x128xf32> to vector<8x128xf32>
    %13 = arith.addf %10, %12 : vector<8x128xf32>
    %cst_11 = arith.constant 0.000000e+00 : f32
    %14 = vector.broadcast %cst_11 : f32 to vector<8x128xf32>
    %15 = arith.maximumf %13, %14 : vector<8x128xf32>
    %16 = arith.truncf %15 : vector<8x128xf32> to vector<8x128xbf16>
    %c0_12 = arith.constant 0 : index
    %c0_13 = arith.constant 0 : index
    %17 = vector.load %arg6[%c0_12, %c0_13] : memref<128x128xbf16, #tpu.memory_space<vmem>>, vector<128x128xbf16>
    %cst_14 = arith.constant dense<0.000000e+00> : vector<8x128xf32>
    %18 = tpu.matmul %16, %17, %cst_14 {dimension_numbers = #tpu.dot_dimension_numbers<[1], [0], [0], [1], [0, 0, 1, 1], [], []>} : vector<8x128xbf16>, vector<128x128xbf16>, vector<8x128xf32> -> vector<8x128xf32>
    %c0_15 = arith.constant 0 : index
    %c0_16 = arith.constant 0 : index
    %19 = vector.load %arg7[%c0_15, %c0_16] : memref<1x128xf32, #tpu.memory_space<vmem>>, vector<1x128xf32>
    %20 = vector.broadcast %19 : vector<1x128xf32> to vector<8x128xf32>
    %21 = arith.addf %18, %20 : vector<8x128xf32>
    %cst_17 = arith.constant 0.000000e+00 : f32
    %22 = vector.broadcast %cst_17 : f32 to vector<8x128xf32>
    %23 = arith.maximumf %21, %22 : vector<8x128xf32>
    %24 = arith.truncf %23 : vector<8x128xf32> to vector<8x128xbf16>
    %c0_18 = arith.constant 0 : index
    %c0_19 = arith.constant 0 : index
    %25 = vector.load %arg8[%c0_18, %c0_19] : memref<128x128xbf16, #tpu.memory_space<vmem>>, vector<128x128xbf16>
    %cst_20 = arith.constant dense<0.000000e+00> : vector<8x128xf32>
    %26 = tpu.matmul %24, %25, %cst_20 {dimension_numbers = #tpu.dot_dimension_numbers<[1], [0], [0], [1], [0, 0, 1, 1], [], []>} : vector<8x128xbf16>, vector<128x128xbf16>, vector<8x128xf32> -> vector<8x128xf32>
    %c0_21 = arith.constant 0 : index
    %c0_22 = arith.constant 0 : index
    %27 = vector.load %arg9[%c0_21, %c0_22] : memref<1x128xf32, #tpu.memory_space<vmem>>, vector<1x128xf32>
    %28 = vector.broadcast %27 : vector<1x128xf32> to vector<8x128xf32>
    %29 = arith.addf %26, %28 : vector<8x128xf32>
    %cst_23 = arith.constant 0.000000e+00 : f32
    %30 = vector.broadcast %cst_23 : f32 to vector<8x128xf32>
    %31 = arith.maximumf %29, %30 : vector<8x128xf32>
    %32 = arith.truncf %31 : vector<8x128xf32> to vector<8x128xbf16>
    %c0_24 = arith.constant 0 : index
    %c0_25 = arith.constant 0 : index
    %33 = vector.load %arg10[%c0_24, %c0_25] : memref<128x128xbf16, #tpu.memory_space<vmem>>, vector<128x128xbf16>
    %cst_26 = arith.constant dense<0.000000e+00> : vector<8x128xf32>
    %34 = tpu.matmul %32, %33, %cst_26 {dimension_numbers = #tpu.dot_dimension_numbers<[1], [0], [0], [1], [0, 0, 1, 1], [], []>} : vector<8x128xbf16>, vector<128x128xbf16>, vector<8x128xf32> -> vector<8x128xf32>
    %c0_27 = arith.constant 0 : index
    %c0_28 = arith.constant 0 : index
    %35 = vector.load %arg11[%c0_27, %c0_28] : memref<1x128xf32, #tpu.memory_space<vmem>>, vector<1x128xf32>
    %36 = vector.broadcast %35 : vector<1x128xf32> to vector<8x128xf32>
    %37 = arith.addf %34, %36 : vector<8x128xf32>
    %38 = tpu.iota {dimensions = array<i32: 1>} : vector<8x128xi32>
    %c64_i32 = arith.constant 64 : i32
    %39 = vector.broadcast %c64_i32 : i32 to vector<8x128xi32>
    %40 = arith.cmpi sge, %38, %39 : vector<8x128xi32>
    %cst_29 = arith.constant -2.000000e+01 : f32
    %cst_30 = arith.constant 2.000000e+00 : f32
    %41 = vector.broadcast %cst_29 : f32 to vector<8x128xf32>
    %42 = arith.maximumf %41, %37 : vector<8x128xf32>
    %43 = vector.broadcast %cst_30 : f32 to vector<8x128xf32>
    %44 = arith.minimumf %43, %42 : vector<8x128xf32>
    %45 = arith.select %40, %44, %37 : vector<8x128xi1>, vector<8x128xf32>
    %c0_31 = arith.constant 0 : index
    %c0_32 = arith.constant 0 : index
    %46 = vector.load %arg12[%c0_31, %c0_32] : memref<8x128xf32, #tpu.memory_space<vmem>>, vector<8x128xf32>
    tpu.vector_store %arg12[%c0_31, %c0_32], %45 {strides = array<i32>} : memref<8x128xf32, #tpu.memory_space<vmem>>, vector<8x128xf32>,
    return
  }
  func.func @transform_0(%arg0: i32) -> (i32, i32) {
    %c0_i32 = arith.constant 0 : i32
    %c0_i32_0 = arith.constant 0 : i32
    return %arg0, %c0_i32 : i32, i32
  }
  func.func @transform_1(%arg0: i32) -> (i32, i32) {
    %c0_i32 = arith.constant 0 : i32
    %c0_i32_0 = arith.constant 0 : i32
    %c0_i32_1 = arith.constant 0 : i32
    return %c0_i32, %c0_i32_0 : i32, i32
  }
  func.func @transform_2(%arg0: i32) -> (i32, i32) {
    %c0_i32 = arith.constant 0 : i32
    %c0_i32_0 = arith.constant 0 : i32
    %c0_i32_1 = arith.constant 0 : i32
    return %c0_i32, %c0_i32_0 : i32, i32
  }
  func.func @transform_3(%arg0: i32) -> (i32, i32) {
    %c0_i32 = arith.constant 0 : i32
    %c0_i32_0 = arith.constant 0 : i32
    %c0_i32_1 = arith.constant 0 : i32
    return %c0_i32, %c0_i32_0 : i32, i32
  }
  func.func @transform_4(%arg0: i32) -> (i32, i32) {
    %c0_i32 = arith.constant 0 : i32
    %c0_i32_0 = arith.constant 0 : i32
    %c0_i32_1 = arith.constant 0 : i32
    return %c0_i32, %c0_i32_0 : i32, i32
  }
  func.func @transform_5(%arg0: i32) -> (i32, i32) {
    %c0_i32 = arith.constant 0 : i32
    %c0_i32_0 = arith.constant 0 : i32
    %c0_i32_1 = arith.constant 0 : i32
    return %c0_i32, %c0_i32_0 : i32, i32
  }
  func.func @transform_6(%arg0: i32) -> (i32, i32) {
    %c0_i32 = arith.constant 0 : i32
    %c0_i32_0 = arith.constant 0 : i32
    %c0_i32_1 = arith.constant 0 : i32
    return %c0_i32, %c0_i32_0 : i32, i32
  }
  func.func @transform_7(%arg0: i32) -> (i32, i32) {
    %c0_i32 = arith.constant 0 : i32
    %c0_i32_0 = arith.constant 0 : i32
    %c0_i32_1 = arith.constant 0 : i32
    return %c0_i32, %c0_i32_0 : i32, i32
  }
  func.func @transform_8(%arg0: i32) -> (i32, i32) {
    %c0_i32 = arith.constant 0 : i32
    %c0_i32_0 = arith.constant 0 : i32
    %c0_i32_1 = arith.constant 0 : i32
    return %c0_i32, %c0_i32_0 : i32, i32
  }
  func.func @transform_9(%arg0: i32) -> (i32, i32) {
    %c0_i32 = arith.constant 0 : i32
    %c0_i32_0 = arith.constant 0 : i32
    %c0_i32_1 = arith.constant 0 : i32
    return %c0_i32, %c0_i32_0 : i32, i32
  }
  func.func @transform_10(%arg0: i32) -> (i32, i32) {
    %c0_i32 = arith.constant 0 : i32
    %c0_i32_0 = arith.constant 0 : i32
    %c0_i32_1 = arith.constant 0 : i32
    return %c0_i32, %c0_i32_0 : i32, i32
  }
  func.func @transform_11(%arg0: i32) -> (i32, i32) {
    %c0_i32 = arith.constant 0 : i32
    %c0_i32_0 = arith.constant 0 : i32
    return %arg0, %c0_i32 : i32, i32
  }
}

</mosaic_0001>

<bundles_post_ra>
// kernel: policy_forward.1
= control target key start
LH: loop header
LB: loop body
LE: loop exit
PB: predicated region body
PF: predicated region fallthrough
CT: control target
= control target key end

     0   :  { %v846_v0 = vmov 0.0   ;;  %vm847_vm0 = vmmov 0   ;;  %s1099_s1 = inlined_call_operand.vmem [shape: bf16[128,128], index: 1, kind: input, shape index: {}]   ;;  %s1100_s3 = inlined_call_operand.vmem [shape: bf16[128,128], index: 3, kind: input, shape index: {}]   ;;  %s1101_s0 = inlined_call_operand.vmem [shape: bf16[8,128], index: 0, kind: input, shape index: {}]   ;;  %s1102_s5 = inlined_call_operand.vmem [shape: bf16[128,128], index: 5, kind: input, shape index: {}]   ;;  %s1103_s2 = inlined_call_operand.vmem [shape: f32[1,128], index: 2, kind: input, shape index: {}]   ;;  %s1104_s7 = inlined_call_operand.vmem [shape: bf16[128,128], index: 7, kind: input, shape index: {}]   ;;  %s1105_s4 = inlined_call_operand.vmem [shape: f32[1,128], index: 4, kind: input, shape index: {}]   ;;  %s1106_s9 = inlined_call_operand.vmem [shape: bf16[128,128], index: 9, kind: input, shape index: {}]   ;;  %s1107_s6 = inlined_call_operand.vmem [shape: f32[1,128], index: 6, kind: input, shape index: {}]   ;;  %s1108_s8 = inlined_call_operand.vmem [shape: f32[1,128], index: 8, kind: input, shape index: {}]   ;;  %s1109_s10 = inlined_call_operand.vmem [shape: f32[1,128], index: 10, kind: input, shape index: {}]   ;;  %s1110_s11 = inlined_call_operand.vmem [shape: f32[8,128], index: 11, kind: output, shape index: {}]  }
   0x1   :  { %704 = vmatprep.subr.bf16.mxu0 %v846_v0  ;;  %v806_v1 = vld [vmem:[%s1099_s1] sm:$0xff]   ;;  %720 = vmatprep.mubr.msk.bf16.mxu0 %vm847_vm0, %v846_v0  ;;  %v807_v2 = vld [vmem:[%s1099_s1 + $0x8] sm:$0xff]   ;;  %v808_v3 = vld [vmem:[%s1099_s1 + $0x10] sm:$0xff]  }
   0x2   :  { %724 = vmatprep.subr.bf16.mxu1 %v846_v0  ;;  %740 = vmatprep.mubr.msk.bf16.mxu1 %vm847_vm0, %v846_v0  ;;  %v814_v4 = vld [vmem:[%s1100_s3] sm:$0xff]   ;;  %v809_v5 = vld [vmem:[%s1099_s1 + $0x18] sm:$0xff]   ;;  %v815_v6 = vld [vmem:[%s1100_s3 + $0x8] sm:$0xff]  }
   0x3   :  { %705 = vmatpush3.bf16.msra.mxu0 %v806_v1  ;;  %725 = vmatpush3.bf16.msra.mxu1 %v814_v4  ;;  %v810_v7 = vld [vmem:[%s1099_s1 + $0x20] sm:$0xff]   ;;  %v816_v8 = vld [vmem:[%s1100_s3 + $0x10] sm:$0xff]   ;;  %v811_v9 = vld [vmem:[%s1099_s1 + $0x28] sm:$0xff]  }
   0x4   :  { %706 = vmatprep.subr.bf16.mxu0 %v846_v0  ;;  %726 = vmatprep.subr.bf16.mxu1 %v846_v0  ;;  %v817_v10 = vld [vmem:[%s1100_s3 + $0x18] sm:$0xff]   ;;  %v812_v11 = vld [vmem:[%s1099_s1 + $0x30] sm:$0xff]   ;;  %v818_v12 = vld [vmem:[%s1100_s3 + $0x20] sm:$0xff]  }
   0x5   :  { %v813_v13 = vld [vmem:[%s1099_s1 + $0x38] sm:$0xff]   ;;  %v819_v14 = vld [vmem:[%s1100_s3 + $0x28] sm:$0xff]   ;;  %v39_v15 = vld [vmem:[%s1101_s0] sm:$0xf] }
   0x6   :  { %v820_v16 = vld [vmem:[%s1100_s3 + $0x30] sm:$0xff]   ;;  %v821_v17 = vld [vmem:[%s1100_s3 + $0x38] sm:$0xff]   ;;  %v822_v18 = vld [vmem:[%s1102_s5] sm:$0xff]  }
   0x7   :  { %707 = vmatpush3.bf16.msra.mxu0 %v807_v2  ;;  %727 = vmatpush3.bf16.msra.mxu1 %v815_v6  ;;  %v823_v19 = vld [vmem:[%s1102_s5 + $0x8] sm:$0xff]   ;;  %v824_v20 = vld [vmem:[%s1102_s5 + $0x10] sm:$0xff]   ;;  %v825_v21 = vld [vmem:[%s1102_s5 + $0x18] sm:$0xff]  }
   0x8   :  { %708 = vmatprep.subr.bf16.mxu0 %v846_v0  ;;  %728 = vmatprep.subr.bf16.mxu1 %v846_v0  ;;  %v826_v22 = vld [vmem:[%s1102_s5 + $0x20] sm:$0xff]   ;;  %v827_v23 = vld [vmem:[%s1102_s5 + $0x28] sm:$0xff]   ;;  %v828_v32 = vld [vmem:[%s1102_s5 + $0x30] sm:$0xff]  }
   0x9   :  { %v614_v24 = vld [vmem:[%s1103_s2] ss:$0 sm:$0xff]  ;;  %v829_v33 = vld [vmem:[%s1102_s5 + $0x38] sm:$0xff]   ;;  %v831_v35 = vld [vmem:[%s1104_s7 + $0x8] sm:$0xff]  }
   0xa   :  { %v830_v34 = vld [vmem:[%s1104_s7] sm:$0xff]   ;;  %v832_v36 = vld [vmem:[%s1104_s7 + $0x10] sm:$0xff]   ;;  %v833_v37 = vld [vmem:[%s1104_s7 + $0x18] sm:$0xff]  }
   0xb   :  { %709 = vmatpush3.bf16.msra.mxu0 %v808_v3  ;;  %729 = vmatpush3.bf16.msra.mxu1 %v816_v8  ;;  %v834_v38 = vld [vmem:[%s1104_s7 + $0x20] sm:$0xff]   ;;  %v835_v39 = vld [vmem:[%s1104_s7 + $0x28] sm:$0xff]   ;;  %v836_v48 = vld [vmem:[%s1104_s7 + $0x30] sm:$0xff]  }
   0xc   :  { %710 = vmatprep.subr.bf16.mxu0 %v846_v0  ;;  %730 = vmatprep.subr.bf16.mxu1 %v846_v0  ;;  %v623_v40 = vld [vmem:[%s1105_s4] ss:$0 sm:$0xff]  ;;  %v837_v49 = vld [vmem:[%s1104_s7 + $0x38] sm:$0xff]   ;;  %v839_v51 = vld [vmem:[%s1106_s9 + $0x8] sm:$0xff]  }
   0xd   :  { %v838_v50 = vld [vmem:[%s1106_s9] sm:$0xff]   ;;  %v840_v52 = vld [vmem:[%s1106_s9 + $0x10] sm:$0xff]   ;;  %v841_v53 = vld [vmem:[%s1106_s9 + $0x18] sm:$0xff]  }
   0xe   :  { %v842_v54 = vld [vmem:[%s1106_s9 + $0x20] sm:$0xff]   ;;  %v843_v55 = vld [vmem:[%s1106_s9 + $0x28] sm:$0xff]   ;;  %v844_v1 = vld [vmem:[%s1106_s9 + $0x30] sm:$0xff]  }
   0xf   :  { %711 = vmatpush3.bf16.msra.mxu0 %v809_v5  ;;  %731 = vmatpush3.bf16.msra.mxu1 %v817_v10  ;;  %v632_v56 = vld [vmem:[%s1107_s6] ss:$0 sm:$0xff]  ;;  %v845_v2 = vld [vmem:[%s1106_s9 + $0x38] sm:$0xff]  }
  0x10   :  { %712 = vmatprep.subr.bf16.mxu0 %v846_v0  ;;  %732 = vmatprep.subr.bf16.mxu1 %v846_v0  ;;  %v641_v3 = vld [vmem:[%s1108_s8] ss:$0 sm:$0xff] }
  0x13   :  { %713 = vmatpush3.bf16.msra.mxu0 %v810_v7  ;;  %733 = vmatpush3.bf16.msra.mxu1 %v818_v12 }
  0x14   :  { %714 = vmatprep.subr.bf16.mxu0 %v846_v0  ;;  %734 = vmatprep.subr.bf16.mxu1 %v846_v0 }
  0x17   :  { %715 = vmatpush3.bf16.msra.mxu0 %v811_v9  ;;  %735 = vmatpush3.bf16.msra.mxu1 %v819_v14 }
  0x18   :  { %716 = vmatprep.subr.bf16.mxu0 %v846_v0  ;;  %736 = vmatprep.subr.bf16.mxu1 %v846_v0 }
  0x1b   :  { %717 = vmatpush3.bf16.msra.mxu0 %v812_v11  ;;  %737 = vmatpush3.bf16.msra.mxu1 %v820_v16  ;;  %v603_v11 = vlaneseq }
  0x1c   :  { %718 = vmatprep.subr.bf16.mxu0 %v846_v0  ;;  %738 = vmatprep.subr.bf16.mxu1 %v846_v0 }
  0x1f   :  { %719 = vmatpush3.bf16.msra.mxu0 %v813_v13  ;;  %739 = vmatpush3.bf16.msra.mxu1 %v821_v17  ;;  %v604_v13 = vand.u32 127, %v603_v11 }
  0x20   :  { %744 = vmatprep.subr.bf16.mxu0 %v846_v0  ;;  %764 = vmatprep.subr.bf16.mxu1 %v846_v0 }
  0x21   :  { %vm605_vm1 = vcmp.ge.s32.totalorder %v604_v13, 64 }
  0x22   :  { %721 = vmatmul.mubr.bf16.vlgmr.msra.gmra.mrb[0].mxu0 %v39_v15 }
  0x23   :  { %760 = vmatprep.mubr.msk.bf16.mxu0 %vm847_vm0, %v846_v0  ;;  %745 = vmatpush3.bf16.msra.mxu0 %v822_v18 }
  0x24   :  { %746 = vmatprep.subr.bf16.mxu0 %v846_v0 }
  0x27   :  { %747 = vmatpush3.bf16.msra.mxu0 %v823_v19 }
  0x28   :  { %748 = vmatprep.subr.bf16.mxu0 %v846_v0 }
  0x2b   :  { %749 = vmatpush3.bf16.msra.mxu0 %v824_v20 }
  0x2c   :  { %750 = vmatprep.subr.bf16.mxu0 %v846_v0 }
  0x2f   :  { %751 = vmatpush3.bf16.msra.mxu0 %v825_v21 }
  0x30   :  { %752 = vmatprep.subr.bf16.mxu0 %v846_v0 }
  0x33   :  { %753 = vmatpush3.bf16.msra.mxu0 %v826_v22 }
  0x34   :  { %754 = vmatprep.subr.bf16.mxu0 %v846_v0 }
  0x37   :  { %755 = vmatpush3.bf16.msra.mxu0 %v827_v23 }
  0x38   :  { %756 = vmatprep.subr.bf16.mxu0 %v846_v0 }
  0x3b   :  { %757 = vmatpush3.bf16.msra.mxu0 %v828_v32 }
  0x3c   :  { %758 = vmatprep.subr.bf16.mxu0 %v846_v0 }
  0x3f   :  { %759 = vmatpush3.bf16.msra.mxu0 %v829_v33 }
  0x40   :  { %784 = vmatprep.subr.bf16.mxu0 %v846_v0 }
  0xf5   :  { %v145_v25 = vpop.f32.mrb[0].mxu0 }
  0xf6   :  { %v146_v26 = vadd.f32 %v614_v24, %v145_v25  ;;  %v722_v27 = vpop.f32.mrb[1].mxu0 }
  0xf7   :  { %v148_v28 = vpop.f32.mrb[2].mxu0 }
  0xf8   :  { %v151_v29 = vmax.f32 %v146_v26, 0.0  ;;  %v723_v30 = vpop.f32.mrb[3].mxu0 }
  0xfa   :  { %v152_v31 = vpack.c.bf16 %v151_v29, %v151_v29 }
  0xfc   :  { %741 = vmatmul.mubr.bf16.vlgmr.msra.gmra.mrb[0].mxu1 %v152_v31 }
  0xfd   :  { %780 = vmatprep.mubr.msk.bf16.mxu1 %vm847_vm0, %v846_v0  ;;  %765 = vmatpush3.bf16.msra.mxu1 %v830_v34 }
  0xfe   :  { %766 = vmatprep.subr.bf16.mxu1 %v846_v0 }
 0x101   :  { %767 = vmatpush3.bf16.msra.mxu1 %v831_v35 }
 0x102   :  { %768 = vmatprep.subr.bf16.mxu1 %v846_v0 }
 0x105   :  { %769 = vmatpush3.bf16.msra.mxu1 %v832_v36 }
 0x106   :  { %770 = vmatprep.subr.bf16.mxu1 %v846_v0 }
 0x109   :  { %771 = vmatpush3.bf16.msra.mxu1 %v833_v37 }
 0x10a   :  { %772 = vmatprep.subr.bf16.mxu1 %v846_v0 }
 0x10d   :  { %773 = vmatpush3.bf16.msra.mxu1 %v834_v38 }
 0x10e   :  { %774 = vmatprep.subr.bf16.mxu1 %v846_v0 }
 0x111   :  { %775 = vmatpush3.bf16.msra.mxu1 %v835_v39 }
 0x112   :  { %776 = vmatprep.subr.bf16.mxu1 %v846_v0 }
 0x115   :  { %777 = vmatpush3.bf16.msra.mxu1 %v836_v48 }
 0x116   :  { %778 = vmatprep.subr.bf16.mxu1 %v846_v0 }
 0x119   :  { %779 = vmatpush3.bf16.msra.mxu1 %v837_v49 }
 0x1cf   :  { %v258_v41 = vpop.f32.mrb[0].mxu1 }
 0x1d0   :  { %v259_v42 = vadd.f32 %v623_v40, %v258_v41  ;;  %v742_v43 = vpop.f32.mrb[1].mxu1 }
 0x1d1   :  { %v261_v44 = vpop.f32.mrb[2].mxu1 }
 0x1d2   :  { %v264_v45 = vmax.f32 %v259_v42, 0.0  ;;  %v743_v46 = vpop.f32.mrb[3].mxu1 }
 0x1d4   :  { %v265_v47 = vpack.c.bf16 %v264_v45, %v264_v45 }
 0x1d6   :  { %761 = vmatmul.mubr.bf16.vlgmr.msra.gmra.mrb[4].mxu0 %v265_v47 }
 0x1d7   :  { %800 = vmatprep.mubr.msk.bf16.mxu0 %vm847_vm0, %v846_v0  ;;  %785 = vmatpush3.bf16.msra.mxu0 %v838_v50 }
 0x1d8   :  { %786 = vmatprep.subr.bf16.mxu0 %v846_v0 }
 0x1db   :  { %787 = vmatpush3.bf16.msra.mxu0 %v839_v51 }
 0x1dc   :  { %788 = vmatprep.subr.bf16.mxu0 %v846_v0 }
 0x1df   :  { %789 = vmatpush3.bf16.msra.mxu0 %v840_v52 }
 0x1e0   :  { %790 = vmatprep.subr.bf16.mxu0 %v846_v0 }
 0x1e3   :  { %791 = vmatpush3.bf16.msra.mxu0 %v841_v53 }
 0x1e4   :  { %792 = vmatprep.subr.bf16.mxu0 %v846_v0 }
 0x1e7   :  { %793 = vmatpush3.bf16.msra.mxu0 %v842_v54 }
 0x1e8   :  { %794 = vmatprep.subr.bf16.mxu0 %v846_v0 }
 0x1eb   :  { %795 = vmatpush3.bf16.msra.mxu0 %v843_v55 }
 0x1ec   :  { %796 = vmatprep.subr.bf16.mxu0 %v846_v0 }
 0x1ef   :  { %797 = vmatpush3.bf16.msra.mxu0 %v844_v1 }
 0x1f0   :  { %798 = vmatprep.subr.bf16.mxu0 %v846_v0  ;;  %v650_v0 = vld [vmem:[%s1109_s10] ss:$0 sm:$0xff] }
 0x1f3   :  { %799 = vmatpush3.bf16.msra.mxu0 %v845_v2 }
 0x2a9   :  { %v371_v57 = vpop.f32.mrb[4].mxu0 }
 0x2aa   :  { %v372_v58 = vadd.f32 %v632_v56, %v371_v57  ;;  %v762_v59 = vpop.f32.mrb[5].mxu0 }
 0x2ab   :  { %v374_v60 = vpop.f32.mrb[6].mxu0 }
 0x2ac   :  { %v377_v61 = vmax.f32 %v372_v58, 0.0  ;;  %v763_v62 = vpop.f32.mrb[7].mxu0 }
 0x2ae   :  { %v378_v63 = vpack.c.bf16 %v377_v61, %v377_v61 }
 0x2b0   :  { %781 = vmatmul.mubr.bf16.vlgmr.msra.gmra.mrb[4].mxu1 %v378_v63 }
 0x383   :  { %v484_v4 = vpop.f32.mrb[4].mxu1 }
 0x384   :  { %v485_v5 = vadd.f32 %v641_v3, %v484_v4  ;;  %v782_v6 = vpop.f32.mrb[5].mxu1 }
 0x385   :  { %v487_v7 = vpop.f32.mrb[6].mxu1 }
 0x386   :  { %v490_v8 = vmax.f32 %v485_v5, 0.0  ;;  %v783_v9 = vpop.f32.mrb[7].mxu1 }
 0x388   :  { %v491_v10 = vpack.c.bf16 %v490_v8, %v490_v8 }
 0x38a   :  { %801 = vmatmul.mubr.bf16.vlgmr.msra.gmra.mrb[8].mxu0 %v491_v10 }
 0x45d   :  { %v597_v12 = vpop.f32.mrb[8].mxu0 }
 0x45e   :  { %v598_v14 = vadd.f32 %v650_v0, %v597_v12  ;;  %v802_v15 = vpop.f32.mrb[9].mxu0 }
 0x45f   :  { %v600_v16 = vpop.f32.mrb[10].mxu0 }
 0x460   :  { %v606_v17 = vmax.f32 %v598_v14, -20.0  ;;  %v803_v18 = vpop.f32.mrb[11].mxu0 }
 0x462   :  { %v607_v19 = vmin.f32 %v606_v17, 2.0 }
 0x464   :  { %v608_v20 = vsel %vm605_vm1, %v607_v19, %v598_v14 }
 0x465   :  { %609 = vst [vmem:[%s1110_s11] sm:$0xff] %v608_v20 }

</bundles_post_ra>
